<compile_context>
chip_gen: v7x
topology: tpu7x:2x2x1
jax: 0.10.0
libtpu: 0.0.40
codegen_flags: <defaults>
</compile_context>

<pallas_src>
import jax
import jax.numpy as jnp
from jax.experimental import pallas as pl
from jax.experimental.pallas import tpu as pltpu

_LANES = 128   # f32 vreg lane width
_TILE_B = 512  # lane-chunk per grid step when the batch is large


def _mlp_kernel(x_ref,    # (1, TB)  input, batch along lanes
                w1_ref,   # (H, H)   hidden1.weight (out, in) -> used as W @ h
                p_ref,    # (H, 8)   packed small params:
                          #          col0=w0, col1=b0, col2=b1, col3=w_fused,
                          #          [0,4]=fused scalar bias
                o_ref):   # (1, TB)
    x = x_ref[...]                                              # (1, TB)
    w0 = p_ref[:, 0:1]                                          # (H, 1)
    b0 = p_ref[:, 1:2]                                          # (H, 1)
    b1 = p_ref[:, 2:3]                                          # (H, 1)
    wf = p_ref[:, 3:4]                                          # (H, 1)
    bf = p_ref[0:1, 4:5]                                        # (1, 1)

    # Layer 0: K=1 contraction -> pure VPU broadcast multiply-add + ReLU.
    h = jnp.maximum(w0 * x + b0, 0.0)                           # (H, TB)
    # Layer 1: the only real MXU matmul, full lane-dense result width.
    h = jnp.dot(w1_ref[...], h, preferred_element_type=jnp.float32)
    h = jnp.maximum(h + b1, 0.0)                                # (H, TB)
    # Fused hidden2 + predict (N=1): VPU multiply + sublane reduce (XLU).
    o = jnp.sum(wf * h, axis=0, keepdims=True) + bf             # (1, TB)
    o_ref[...] = o.astype(o_ref.dtype)                          # lane-dense store


def prepare_params(params):
    """One-time (per weight update) layout/fold work, hoisted out of the forward path.

    params: PyTorch-layout weights (out, in) and biases (out,).
    Returns dict with:
      w1     : (H, H) f32
      packed : (H, 8) f32  -- w0, b0, b1, w_fused columns; fused bias at [0, 4]
    """
    H = params["w1"].shape[0]
    n_output = params["wp"].shape[0]
    n_feature = params["w0"].shape[1]
    assert n_feature == 1, "kernel specialized for n_feature == 1 (as in Regression.py)"
    assert n_output == 1, "kernel specialized for n_output == 1 (as in Regression.py)"

    # Fold hidden2 + predict (no activation in between): exact up to fp reassociation.
    w_fused = params["wp"] @ params["w2"]                       # (1, H)
    b_fused = params["wp"] @ params["b2"] + params["bp"]        # (1,)

    packed = jnp.zeros((H, 8), jnp.float32)
    packed = packed.at[:, 0].set(params["w0"][:, 0].astype(jnp.float32))
    packed = packed.at[:, 1].set(params["b0"].astype(jnp.float32))
    packed = packed.at[:, 2].set(params["b1"].astype(jnp.float32))
    packed = packed.at[:, 3].set(w_fused[0, :].astype(jnp.float32))
    packed = packed.at[0, 4].set(b_fused[0].astype(jnp.float32))

    return dict(w1=params["w1"].astype(jnp.float32), packed=packed)


def net_forward(x, prepared):
    """x: (B, 1) float32.  prepared: output of prepare_params()."""
    B, n_feature = x.shape
    assert n_feature == 1, "kernel specialized for n_feature == 1"
    w1 = prepared["w1"]
    packed = prepared["packed"]
    H = w1.shape[0]

    # Lane-chunk size: single 128-multiple tile for small B, 512-wide chunks for big B.
    if B > _TILE_B:
        tile_b = _TILE_B
    else:
        tile_b = _LANES * pl.cdiv(B, _LANES)
    Bp = pl.cdiv(B, tile_b) * tile_b
    grid = (Bp // tile_b,)

    # Pad batch to a lane-dense multiple of tile_b and put it on the lane axis.
    xT = jnp.pad(x[:, 0].astype(jnp.float32), (0, Bp - B))[None, :]   # (1, Bp)

    flops = 2 * Bp * (H + H * H + H)
    bytes_accessed = 4 * (2 * Bp + H * H + H * 8)
    cost = pl.CostEstimate(flops=flops, transcendentals=0,
                           bytes_accessed=bytes_accessed)

    oT = pl.pallas_call(
        _mlp_kernel,
        out_shape=jax.ShapeDtypeStruct((1, Bp), jnp.float32),
        grid_spec=pltpu.PrefetchScalarGridSpec(
            num_scalar_prefetch=0,
            grid=grid,
            in_specs=[
                pl.BlockSpec((1, tile_b), lambda i: (0, i)),   # x: lane-chunked
                pl.BlockSpec((H, H), lambda i: (0, 0)),        # w1: VMEM-resident
                pl.BlockSpec((H, 8), lambda i: (0, 0)),        # packed small params
            ],
            out_specs=pl.BlockSpec((1, tile_b), lambda i: (0, i)),
        ),
        compiler_params=pltpu.CompilerParams(
            dimension_semantics=("parallel",)),                 # v7x: 2 TCs split chunks
        cost_estimate=cost,
    )(xT, w1, packed)

    # Back to PyTorch layout (B, n_output); padded garbage lanes sliced off here.
    return oT[0, :B][:, None]


def init_params(key, n_feature, n_hidden, n_output):
    """Deterministic PyTorch-Linear-style init; weights stored (out, in) like torch."""
    def linear(key, fan_in, fan_out):
        kw, kb = jax.random.split(key)
        bound = 1.0 / jnp.sqrt(jnp.float32(fan_in))
        w = jax.random.uniform(kw, (fan_out, fan_in), jnp.float32, -bound, bound)
        b = jax.random.uniform(kb, (fan_out,), jnp.float32, -bound, bound)
        return w, b

    k0, k1, k2, kp = jax.random.split(key, 4)
    w0, b0 = linear(k0, n_feature, n_hidden)
    w1, b1 = linear(k1, n_hidden, n_hidden)
    w2, b2 = linear(k2, n_hidden, n_hidden)
    wp, bp = linear(kp, n_hidden, n_output)
    return dict(w0=w0, b0=b0, w1=w1, b1=b1, w2=w2, b2=b2, wp=wp, bp=bp)


def net_forward_ref(x, p):
    """Pure-JAX reference matching PyTorch semantics exactly (unfused)."""
    h = jnp.maximum(x @ p["w0"].T + p["b0"], 0.0)
    h = jnp.maximum(h @ p["w1"].T + p["b1"], 0.0)
    h = h @ p["w2"].T + p["b2"]
    return h @ p["wp"].T + p["bp"]


if __name__ == "__main__":
    key = jax.random.PRNGKey(0)

    # Matches the script: x = torch.unsqueeze(torch.linspace(-1, 1, 100), dim=1)
    n_feature, n_hidden, n_output = 1, 32, 1
    x = jnp.linspace(-1.0, 1.0, 100, dtype=jnp.float32)[:, None]  # (100, 1)

    params = init_params(key, n_feature, n_hidden, n_output)
    prepared = prepare_params(params)   # one-time fold/pack, not in the hot path

    out = jax.block_until_ready(net_forward(x, prepared))
    ref = net_forward_ref(x, params)

    assert out.shape == (100, n_output), out.shape
    # rtol slightly loosened: the hidden2+predict fold reassociates fp adds.
    assert jnp.allclose(out, ref, atol=1e-5, rtol=1e-4), "mismatch vs JAX reference"
    print("KERNEL_OK")
</pallas_src>

<mosaic_0001>
module attributes {stable_mosaic.version = 11 : i64} {
  func.func @_mlp_kernel(%arg0: i32, %arg1: memref<1x128xf32, #tpu.memory_space<vmem>>, %arg2: memref<32x32xf32, #tpu.memory_space<vmem>>, %arg3: memref<32x8xf32, #tpu.memory_space<vmem>>, %arg4: memref<1x128xf32, #tpu.memory_space<vmem>>) attributes {dimension_semantics = [#tpu.dimension_semantics<parallel>], iteration_bounds = array<i64: 1>, scalar_prefetch = 0 : i64, scratch_operands = 0 : i64, tpu.core_type = #tpu.core_type<tc>, window_params = [{transform_indices = @transform_0, window_bounds = array<i64: 1, 128>}, {pipeline_mode = #tpu.pipeline_mode<synchronous>, transform_indices = @transform_1, window_bounds = array<i64: 32, 32>}, {pipeline_mode = #tpu.pipeline_mode<synchronous>, transform_indices = @transform_2, window_bounds = array<i64: 32, 8>}, {transform_indices = @transform_3, window_bounds = array<i64: 1, 128>}]} {
    %c0 = arith.constant 0 : index
    %c0_0 = arith.constant 0 : index
    %0 = vector.load %arg1[%c0, %c0_0] : memref<1x128xf32, #tpu.memory_space<vmem>>, vector<1x128xf32>
    %c0_1 = arith.constant 0 : index
    %c0_2 = arith.constant 0 : index
    %1 = vector.load %arg3[%c0_1, %c0_2] : memref<32x8xf32, #tpu.memory_space<vmem>>, vector<32x1xf32>
    %c0_3 = arith.constant 0 : index
    %c1 = arith.constant 1 : index
    %2 = vector.load %arg3[%c0_3, %c1] : memref<32x8xf32, #tpu.memory_space<vmem>>, vector<32x1xf32>
    %c0_4 = arith.constant 0 : index
    %c2 = arith.constant 2 : index
    %3 = vector.load %arg3[%c0_4, %c2] : memref<32x8xf32, #tpu.memory_space<vmem>>, vector<32x1xf32>
    %c0_5 = arith.constant 0 : index
    %c3 = arith.constant 3 : index
    %4 = vector.load %arg3[%c0_5, %c3] : memref<32x8xf32, #tpu.memory_space<vmem>>, vector<32x1xf32>
    %c0_6 = arith.constant 0 : index
    %c4 = arith.constant 4 : index
    %5 = vector.load %arg3[%c0_6, %c4] : memref<32x8xf32, #tpu.memory_space<vmem>>, vector<1x1xf32>
    %6 = vector.broadcast %1 : vector<32x1xf32> to vector<32x128xf32>
    %7 = vector.broadcast %0 : vector<1x128xf32> to vector<32x128xf32>
    %8 = arith.mulf %6, %7 : vector<32x128xf32>
    %9 = vector.broadcast %2 : vector<32x1xf32> to vector<32x128xf32>
    %10 = arith.addf %8, %9 : vector<32x128xf32>
    %cst = arith.constant 0.000000e+00 : f32
    %11 = vector.broadcast %cst : f32 to vector<32x128xf32>
    %12 = arith.maximumf %10, %11 : vector<32x128xf32>
    %c0_7 = arith.constant 0 : index
    %c0_8 = arith.constant 0 : index
    %13 = vector.load %arg2[%c0_7, %c0_8] : memref<32x32xf32, #tpu.memory_space<vmem>>, vector<32x32xf32>
    %cst_9 = arith.constant dense<0.000000e+00> : vector<32x128xf32>
    %14 = tpu.matmul %13, %12, %cst_9 {dimension_numbers = #tpu.dot_dimension_numbers<[1], [0], [0], [1], [0, 0, 1, 1], [], []>} : vector<32x32xf32>, vector<32x128xf32>, vector<32x128xf32> -> vector<32x128xf32>
    %15 = vector.broadcast %3 : vector<32x1xf32> to vector<32x128xf32>
    %16 = arith.addf %14, %15 : vector<32x128xf32>
    %cst_10 = arith.constant 0.000000e+00 : f32
    %17 = vector.broadcast %cst_10 : f32 to vector<32x128xf32>
    %18 = arith.maximumf %16, %17 : vector<32x128xf32>
    %19 = vector.broadcast %4 : vector<32x1xf32> to vector<32x128xf32>
    %20 = arith.mulf %19, %18 : vector<32x128xf32>
    %cst_11 = arith.constant dense<0.000000e+00> : vector<128xf32>
    %21 = vector.multi_reduction <add>, %20, %cst_11 [0] : vector<32x128xf32> to vector<128xf32>
    %22 = vector.shape_cast %21 : vector<128xf32> to vector<1x128xf32>
    %23 = vector.broadcast %5 : vector<1x1xf32> to vector<1x128xf32>
    %24 = arith.addf %22, %23 : vector<1x128xf32>
    %c0_12 = arith.constant 0 : index
    %c0_13 = arith.constant 0 : index
    %25 = vector.load %arg4[%c0_12, %c0_13] : memref<1x128xf32, #tpu.memory_space<vmem>>, vector<1x128xf32>
    tpu.vector_store %arg4[%c0_12, %c0_13], %24 {strides = array<i32>} : memref<1x128xf32, #tpu.memory_space<vmem>>, vector<1x128xf32>,
    return
  }
  func.func @transform_0(%arg0: i32) -> (i32, i32) {
    %c0_i32 = arith.constant 0 : i32
    %c0_i32_0 = arith.constant 0 : i32
    return %c0_i32, %arg0 : i32, i32
  }
  func.func @transform_1(%arg0: i32) -> (i32, i32) {
    %c0_i32 = arith.constant 0 : i32
    %c0_i32_0 = arith.constant 0 : i32
    %c0_i32_1 = arith.constant 0 : i32
    return %c0_i32, %c0_i32_0 : i32, i32
  }
  func.func @transform_2(%arg0: i32) -> (i32, i32) {
    %c0_i32 = arith.constant 0 : i32
    %c0_i32_0 = arith.constant 0 : i32
    %c0_i32_1 = arith.constant 0 : i32
    return %c0_i32, %c0_i32_0 : i32, i32
  }
  func.func @transform_3(%arg0: i32) -> (i32, i32) {
    %c0_i32 = arith.constant 0 : i32
    %c0_i32_0 = arith.constant 0 : i32
    return %c0_i32, %arg0 : i32, i32
  }
}

</mosaic_0001>

<bundles_post_ra>
// kernel: tpu_custom_call.1
= control target key start
LH: loop header
LB: loop body
LE: loop exit
PB: predicated region body
PF: predicated region fallthrough
CT: control target
= control target key end

     0   :  { %v327_v1 = vmov 1   ;;  %v328_v2 = vmov 0   ;;  %s399_s0 = inlined_call_operand.vmem [shape: f32[1,128], index: 0, kind: input, shape index: {}]   ;;  %s400_s1 = inlined_call_operand.vmem [shape: f32[32,32], index: 1, kind: input, shape index: {}]   ;;  %s401_s2 = inlined_call_operand.vmem [shape: f32[32,8], index: 2, kind: input, shape index: {}]   ;;  %s402_s3 = inlined_call_operand.hbm [shape: f32[1,128], index: 3, kind: output, shape index: {}]  }
   0x1   :  { %v16_v0 = vld [vmem:[%s401_s2] sm:$0xff]  ;;  %293 = vset.pattern.permute.xlu1 %v327_v1  ;;  %292 = vset.pattern.permute.xlu0 %v328_v2 }
   0x2   :  { %8 = vsyncpa [#allocation3], 0  ;;  %52 = vperm.xlu1 %293, %v16_v0   ;;  %23 = vperm.xlu0 %292, %v16_v0   ;;  %v17_v3 = vld [vmem:[%s401_s2 + $0x8] sm:$0xff]  ;;  %v18_v4 = vld [vmem:[%s401_s2 + $0x10] sm:$0xff]  ;;  %vm95_vm0 = vcmask 261120   ;;  %v329_v8 = vmov 2  }
   0x3   :  { %v19_v5 = vld [vmem:[%s401_s2 + $0x18] sm:$0xff]  ;;  %v75_v6 = vld [vmem:[%s400_s1] sm:$0xff]  ;;  %v77_v7 = vld [vmem:[%s400_s1 + $0x10] sm:$0xff]  ;;  %v330_v9 = vmov 3   ;;  %v331_v10 = vmov 4  }
   0x4   :  { %268 = vmatprep.mubr.msk.f32.mxu0 %vm95_vm0, %v75_v6  ;;  %271 = vmatprep.mubr.msk.f32.mxu1 %vm95_vm0, %v77_v7  ;;  %v20_v11 = vld [vmem:[%s401_s2] sm:$0x1]  ;;  %v76_v35 = vld [vmem:[%s400_s1 + $0x8] sm:$0xff]  ;;  %v78_v36 = vld [vmem:[%s400_s1 + $0x18] sm:$0xff]  ;;  %s332_s1 = smov [#allocation2]  }
   0x5   :  { %v247_v12 = vld [vmem:[%s399_s0] ss:$0 sm:$0xff]  ;;  %s239_s30 = sshll.u32 %s332_s1, 4  ;;  %s240_s30 = int_to_ptr.vmem [resolvable:$true] %s239_s30 }
   0x6   :  { %56 = vperm.xlu1 %293, %v17_v3   ;;  %28 = vperm.xlu0 %292, %v17_v3   ;;  %s303_s4 = scalar_lea.vmem %s240_s30, 16  ;;  %s307_s5 = scalar_lea.vmem %s240_s30, 32 }
   0x7   :  { %p304_p0 = scmp.ne.s32.totalorder %s240_s30, %s303_s4  ;;  %p308_p1 = scmp.lt.s32.totalorder %s240_s30, %s240_s30 }
   0x8   :  { %p309_p2 = scmp.lt.s32.totalorder %s307_s5, %s303_s4 }
   0xa   :  { %294 = vset.pattern.permute.xlu1 %v328_v2  ;;  %33 = vperm.xlu0 %292, %v18_v4   ;;  %p310_p3 = por %p309_p2, %p308_p1 }
   0xb   :  { %38 = vperm.xlu1 %294, %v19_v5  }
   0xc   :  { %p311_p4 = pnand %p310_p3, %p304_p0 }
   0xe   :  { %295 = vset.pattern.permute.xlu0 %v327_v1 }
   0xf   :  { %296 = vset.pattern.permute.xlu1 %v327_v1  ;;  %60 = vperm.xlu0 %295, %v18_v4  }
  0x10   :  { %64 = vperm.xlu1 %296, %v19_v5  }
  0x13   :  { %298 = vset.pattern.permute.xlu0 %v329_v8 }
  0x14   :  { %297 = vset.pattern.permute.xlu1 %v329_v8  ;;  %84 = vperm.xlu0 %298, %v17_v3  }
  0x15   :  { %80 = vperm.xlu1 %297, %v16_v0  }
  0x18   :  { %299 = vset.pattern.permute.xlu0 %v330_v9 }
  0x19   :  { %88 = vperm.xlu1 %297, %v18_v4   ;;  %198 = vperm.xlu0 %299, %v16_v0  }
  0x1d   :  { %92 = vperm.xlu1 %297, %v19_v5   ;;  %210 = vperm.xlu0 %299, %v19_v5  }
  0x21   :  { %300 = vset.pattern.permute.xlu1 %v330_v9  ;;  %302 = vset.pattern.permute.xlu0 %v331_v10 }
  0x22   :  { %202 = vperm.xlu1 %300, %v17_v3  }
  0x26   :  { %206 = vperm.xlu1 %300, %v18_v4  }
  0x2a   :  { %301 = vset.pattern.permute.xlu1 %v331_v10 }
  0x2b   :  { %228 = vperm.xlu1 %301, %v20_v11  }
  0x81   :  { %v53_v13 = vpop.permute.xlu1 %52  ;;  %v24_v14 = vpop.permute.xlu0 %23 }
  0x82   :  { %v47_v15 = vmul.f32 %v247_v12, %v24_v14 }
  0x84   :  { %v67_v18 = vadd.f32 %v53_v13, %v47_v15 }
  0x85   :  { %v57_v16 = vpop.permute.xlu1 %56  ;;  %v29_v17 = vpop.permute.xlu0 %28 }
  0x86   :  { %v48_v19 = vmul.f32 %v247_v12, %v29_v17  ;;  %v71_v22 = vmax.f32 %v67_v18, 0.0 }
  0x88   :  { %v68_v20 = vadd.f32 %v57_v16, %v48_v19 }
  0x89   :  { %v34_v21 = vpop.permute.xlu0 %33 }
  0x8a   :  { %v72_v23 = vmax.f32 %v68_v20, 0.0  ;;  %v39_v24 = vpop.permute.xlu1 %38  ;;  %v49_v26 = vmul.f32 %v247_v12, %v34_v21 }
  0x8b   :  { %v50_v27 = vmul.f32 %v247_v12, %v39_v24 }
  0x8c   :  { %v274_v25 = vpack.c.bf16 %v72_v23, %v71_v22 }
  0x8e   :  { %v61_v28 = vpop.permute.xlu0 %60  ;;  %275 = vmatprep.subr.bf16.mxu0 %v274_v25  ;;  %282 = vmatprep.subr.bf16.mxu1 %v274_v25 }
  0x8f   :  { %v69_v29 = vadd.f32 %v61_v28, %v49_v26  ;;  %v65_v30 = vpop.permute.xlu1 %64  ;;  %277 = vmatpush3.bf16.msra.mxu0 %v274_v25  ;;  %284 = vmatpush3.bf16.msra.mxu1 %v274_v25 }
  0x90   :  { %v70_v31 = vadd.f32 %v65_v30, %v50_v27 }
  0x91   :  { %v73_v32 = vmax.f32 %v69_v29, 0.0 }
  0x92   :  { %v74_v33 = vmax.f32 %v70_v31, 0.0 }
  0x93   :  { %v85_v39 = vpop.permute.xlu0 %84 }
  0x94   :  { %v278_v34 = vpack.c.bf16 %v74_v33, %v73_v32  ;;  %v81_v37 = vpop.permute.xlu1 %80 }
  0x96   :  { %279 = vmatprep.subr.bf16.mxu0 %v278_v34  ;;  %283 = vmatprep.subr.bf16.mxu1 %v278_v34 }
  0x97   :  { %281 = vmatpush3.bf16.msra.mxu0 %v278_v34  ;;  %285 = vmatpush3.bf16.msra.mxu1 %v278_v34 }
  0x98   :  { %v89_v38 = vpop.permute.xlu1 %88  ;;  %v199_v42 = vpop.permute.xlu0 %198 }
  0x9a   :  { %269 = vmatmul.mubr.msk.f32.vlgmr.msra.gmra.mrb[0].mxu0 %vm95_vm0, %v76_v35  ;;  %272 = vmatmul.mubr.msk.f32.vlgmr.msra.gmra.mrb[0].mxu1 %vm95_vm0, %v78_v36 }
  0x9c   :  { %v93_v40 = vpop.permute.xlu1 %92  ;;  %v211_v58 = vpop.permute.xlu0 %210 }
  0xa1   :  { %v203_v41 = vpop.permute.xlu1 %202 }
  0xa5   :  { %v207_v57 = vpop.permute.xlu1 %206 }
  0xaa   :  { %v229_v5 = vpop.permute.xlu1 %228 }
 0x16d   :  { %v270_v43 = vpop.f32.mrb[0].mxu0  ;;  %v273_v44 = vpop.f32.mrb[0].mxu1 }
 0x16e   :  { %v180_v45 = vadd.f32 %v270_v43, %v85_v39  ;;  %v174_v46 = vpop.f32.mrb[1].mxu0  ;;  %v184_v47 = vpop.f32.mrb[1].mxu1  ;;  %v190_v48 = vadd.f32 %v273_v44, %v93_v40 }
 0x16f   :  { %v175_v49 = vadd.f32 %v174_v46, %v81_v37  ;;  %v185_v50 = vadd.f32 %v184_v47, %v89_v38 }
 0x170   :  { %v194_v51 = vmax.f32 %v180_v45, 0.0  ;;  %v196_v55 = vmax.f32 %v190_v48, 0.0 }
 0x171   :  { %v193_v52 = vmax.f32 %v175_v49, 0.0  ;;  %v195_v53 = vmax.f32 %v185_v50, 0.0 }
 0x172   :  { %v214_v54 = vmul.f32 %v203_v41, %v194_v51  ;;  %v216_v62 = vmul.f32 %v211_v58, %v196_v55 }
 0x173   :  { %v213_v56 = vmul.f32 %v199_v42, %v193_v52  ;;  %v215_v59 = vmul.f32 %v207_v57, %v195_v53 }
 0x175   :  { %v217_v60 = vadd.f32 %v214_v54, %v213_v56 }
 0x177   :  { %v218_v61 = vadd.f32 %v217_v60, %v215_v59 }
 0x179   :  { %v219_v63 = vadd.f32 %v218_v61, %v216_v62 }
 0x17b   :  { %v220_v0 = vrot.slane %v219_v63, 4 }
 0x17d   :  { %v221_v1 = vadd.f32 %v220_v0, %v219_v63 }
 0x17f   :  { %v222_v2 = vrot.slane %v221_v1, 2 }
 0x181   :  { %v223_v3 = vadd.f32 %v222_v2, %v221_v1 }
 0x183   :  { %v224_v4 = vrot.slane %v223_v3, 1 }
 0x185   :  { %v225_v6 = vadd.f32 %v224_v4, %v223_v3 }
 0x187   :  { %v231_v7 = vadd.f32 %v229_v5, %v225_v6 }
 0x189   :  { %232 = vst [vmem:[#allocation2] sm:$0x1] %v231_v7 }
 0x18a   :  { %314 = shalt.err (!%p311_p4)
}
 0x18b   :  { %s315_s8 = scalar_lea.hbm %s402_s3, 16 }
 0x18c   :  { %p316_p5 = scmp.ne.s32.totalorder %s402_s3, %s315_s8  ;;  %p319_p6 = scmp.lt.u32.totalorder %s315_s8, %s402_s3 }
 0x18e   :  { %p321_p7 = pnand %p319_p6, %p316_p5 }
 0x190   :  { %324 = shalt.err (!%p321_p7)
}
 0x191   :  { %242 = dma.vmem_to_hbm [thread:$0]  %s240_s30, 16, %s402_s3, [#allocation3]  }
 0x192   :  { %325 = dma.done.wait [#allocation3], 16  }
 0x193   :  { %326 = vsyncadd [#allocation3], 4294967280 }
 0x194   :  { %246 = vsyncpa [#allocation3], 1 }

</bundles_post_ra>
